<compile_context>
chip_gen: v7x
topology: tpu7x:2x2x1
jax: 0.10.0
libtpu: 0.0.40
codegen_flags: <defaults>
</compile_context>

<pallas_src>
import functools

import numpy as np
import jax
import jax.numpy as jnp
from jax import lax
from jax.experimental import pallas as pl
from jax.experimental.pallas import tpu as pltpu

_BIG = 1e30        # finite stand-in for +inf deaths (essential classes)
_NEG_BIG = -1e30   # padding sentinel (gives tent == 0, like the zero rows in the ref)
_P_CAP = 128       # static pair cap (avoids per-call recompiles)
_P_CHUNK = 32      # pair-axis streaming chunk (bounds vreg pressure)
_LANE = 128        # lane width: step axis padded to a multiple of this


# ----------------------------------------------------------------------------
# Host-side persistence-pair extraction (replaces gudhi.CubicalComplex).
# ----------------------------------------------------------------------------
def _uf_find(parent, i):
    root = i
    while parent[root] != root:
        root = parent[root]
    while parent[i] != root:
        parent[i], i = root, parent[i]
    return root


def _h0_pairs(f):
    """0-dim sublevel persistence of the V-construction (4-connectivity, elder rule)."""
    H, W = f.shape
    vals = f.reshape(-1)
    order = np.argsort(vals, kind="stable")
    parent = np.full(H * W, -1, dtype=np.int64)
    comp_birth = np.zeros(H * W, dtype=np.float64)
    pairs = []
    for v in order:
        v = int(v)
        parent[v] = v
        comp_birth[v] = vals[v]
        r, c = divmod(v, W)
        for dr, dc in ((-1, 0), (1, 0), (0, -1), (0, 1)):
            rr, cc = r + dr, c + dc
            if 0 <= rr < H and 0 <= cc < W:
                u = rr * W + cc
                if parent[u] != -1:
                    ru, rv = _uf_find(parent, u), _uf_find(parent, v)
                    if ru != rv:
                        if comp_birth[ru] <= comp_birth[rv]:
                            old, young = ru, rv
                        else:
                            old, young = rv, ru
                        if vals[v] > comp_birth[young]:
                            pairs.append((float(comp_birth[young]), float(vals[v])))
                        parent[young] = old
    # Essential connected component (death = +inf in gudhi); over the finite
    # evaluation interval a huge finite death gives the identical tent t - birth.
    pairs.append((float(vals.min()), _BIG))
    return pairs


def _h1_pairs(f):
    """1-dim sublevel persistence of the V-construction via Alexander duality:
    0-dim superlevel persistence of the complement, computed by union-find over
    every cell of the cubical grid (Khalimsky coordinates) plus an 'outside' node."""
    H, W = f.shape
    KH, KW = 2 * H - 1, 2 * W - 1
    ii = np.arange(KH)[:, None]
    jj = np.arange(KW)[None, :]
    r0, r1 = ii // 2, (ii + 1) // 2
    c0, c1 = jj // 2, (jj + 1) // 2
    vals = np.maximum(np.maximum(f[r0, c0], f[r0, c1]),
                      np.maximum(f[r1, c0], f[r1, c1]))
    vflat = vals.reshape(-1)
    N = KH * KW
    OUT = N
    parent = np.full(N + 1, -1, dtype=np.int64)
    birth = np.zeros(N + 1, dtype=np.float64)
    parent[OUT] = OUT
    birth[OUT] = np.inf
    order = np.argsort(-vflat, kind="stable")
    pairs = []
    for cid in order:
        cid = int(cid)
        parent[cid] = cid
        birth[cid] = vflat[cid]
        i, j = divmod(cid, KW)
        nbrs = []
        for di, dj in ((-1, 0), (1, 0), (0, -1), (0, 1)):
            ni, nj = i + di, j + dj
            if 0 <= ni < KH and 0 <= nj < KW:
                nbrs.append(ni * KW + nj)
        if i == 0 or i == KH - 1 or j == 0 or j == KW - 1:
            nbrs.append(OUT)
        for u in nbrs:
            if parent[u] == -1:
                continue
            ru, rc = _uf_find(parent, u), _uf_find(parent, cid)
            if ru == rc:
                continue
            if birth[ru] >= birth[rc]:
                old, young = ru, rc
            else:
                old, young = rc, ru
            if birth[young] > vflat[cid]:
                # superlevel-H0 pair (birth[young], vflat[cid]) <-> sublevel-H1 pair
                pairs.append((float(vflat[cid]), float(birth[young])))
            parent[young] = old
    return pairs


# ----------------------------------------------------------------------------
# Pallas kernel: tent-function evaluation + running top-K_max landscape.
# One grid step per (image, homology dim); pair axis streamed in chunks.
# ----------------------------------------------------------------------------
def _landscape_kernel(bd_ref, out_ref, *, p_cap, p_chunk, k_max, t_min, dt):
    # bd_ref : (1, 1, p_cap, 2) f32 block -- col 0 = birth, col 1 = death
    # out_ref: (1, 1, k_max, steps_pad) f32 block (lane-dense step axis)
    steps_pad = out_ref.shape[-1]

    # tseq generated in-kernel on the lane axis: t[j] = t_min + j*dt (no input DMA).
    lane = lax.broadcasted_iota(jnp.int32, (1, steps_pad), 1).astype(jnp.float32)
    t = jnp.float32(t_min) + jnp.float32(dt) * lane                  # (1, steps_pad)

    # Row-index iotas for the knockout arg-reduce; hoisted once per grid step and
    # reused by every chunk and every k iteration.
    row_chunk = lax.broadcasted_iota(jnp.int32, (p_chunk, 1), 0)
    row_merge = lax.broadcasted_iota(jnp.int32, (2 * k_max, 1), 0)

    def topk_desc(vals, row_idx):
        # Per-column descending top-k of vals (R, steps_pad), R >= k_max.
        # Knocks out exactly one arg-max row per pass; value-equivalent to -np.sort.
        r = vals.shape[0]
        cur = vals
        outs = []
        for k in range(k_max):
            m = jnp.max(cur, axis=0, keepdims=True)                  # (1, steps_pad)
            outs.append(m)
            if k + 1 < k_max:
                first = jnp.min(jnp.where(cur == m, row_idx, r),
                                axis=0, keepdims=True)
                cur = jnp.where(row_idx == first, jnp.float32(-jnp.inf), cur)
        return jnp.concatenate(outs, axis=0)                         # (k_max, steps_pad)

    n_chunks = p_cap // p_chunk

    def chunk_body(c, topk):
        start = pl.multiple_of(c * p_chunk, p_chunk)
        bd = bd_ref[0, 0, pl.ds(start, p_chunk), :]                  # one (p_chunk, 2) load
        b = bd[:, 0:1]                                               # (p_chunk, 1)
        d = bd[:, 1:2]                                               # (p_chunk, 1)
        land = jnp.maximum(jnp.minimum(t - b, d - t), 0.0)           # (p_chunk, steps_pad)
        ck = topk_desc(land, row_chunk)                              # chunk-local top-k
        merged = jnp.concatenate([topk, ck], axis=0)                 # (2*k_max, steps_pad)
        return topk_desc(merged, row_merge)                          # running top-k

    # Tents are >= 0 and the reference pads `land` with zero rows up to K_max,
    # so a zero-initialised running top-K is exact.
    topk0 = jnp.zeros((k_max, steps_pad), jnp.float32)
    topk = lax.fori_loop(0, n_chunks, chunk_body, topk0, unroll=True)

    # Single lane-dense store of the whole (1, 1, k_max, steps_pad) output block.
    out_ref[...] = topk.reshape(out_ref.shape)


@functools.lru_cache(maxsize=None)
def _build_landscape_call(batch, n_dims, p_cap, k_max, steps, t_min, dt):
    steps_pad = max(_LANE, ((steps + _LANE - 1) // _LANE) * _LANE)
    p_chunk = p_cap if k_max > _P_CHUNK else min(_P_CHUNK, p_cap)
    assert p_cap % p_chunk == 0 and p_chunk >= k_max

    kernel = functools.partial(_landscape_kernel, p_cap=p_cap, p_chunk=p_chunk,
                               k_max=k_max, t_min=t_min, dt=dt)
    call = pl.pallas_call(
        kernel,
        out_shape=jax.ShapeDtypeStruct((batch, n_dims, k_max, steps_pad), jnp.float32),
        grid=(batch, n_dims),
        in_specs=[pl.BlockSpec((1, 1, p_cap, 2), lambda b, i: (b, i, 0, 0))],
        out_specs=pl.BlockSpec((1, 1, k_max, steps_pad), lambda b, i: (b, i, 0, 0)),
        compiler_params=pltpu.CompilerParams(
            dimension_semantics=("parallel", "parallel")),
    )

    @jax.jit
    def run(bd):
        slab = call(bd)                              # (B, n_dims, k_max, steps_pad)
        return slab[:, :, :, :steps]                 # (B, n_dims, k_max, steps)

    return run


def cubical_pl_landscape(bd, *, k_max, steps, t_min, t_max):
    """bd: (B, n_dims, p_cap, 2) f32  ->  (B, n_dims, k_max, steps) f32."""
    B, n_dims, p_cap, _ = bd.shape
    dt = (t_max - t_min) / (steps - 1) if steps > 1 else 0.0
    run = _build_landscape_call(B, n_dims, p_cap, k_max, steps, float(t_min), float(dt))
    return run(bd)


# ----------------------------------------------------------------------------
# Module wrapper (forward pass only).
# ----------------------------------------------------------------------------
class CubicalPL:
    def __init__(self, constr="V", sublevel=True, interval=(0.02, 0.15), steps=32,
                 K_max=2, dimensions=(0, 1)):
        assert constr == "V", "Only the V-construction is implemented."
        assert set(dimensions) <= {0, 1}, "2-D images: only homology dims 0 and 1."
        self.constr = constr
        self.sublevel = sublevel
        self.t_min, self.t_max = interval
        self.steps = steps
        self.tseq = np.linspace(interval[0], interval[1], steps)
        self.K_max = K_max
        self.dimensions = list(dimensions)

    def _pairs_by_dim(self, x_np):
        all_pairs = {0: _h0_pairs(x_np), 1: _h1_pairs(x_np)}
        return [all_pairs[d] for d in self.dimensions]

    def _pack_bd(self, pairs_per_image):
        D = len(self.dimensions)
        max_n = 1
        for per_dim in pairs_per_image:
            for pairs in per_dim:
                max_n = max(max_n, len(pairs))
        # Static pair cap: 128, bumped only in units of 128 for very dense images
        # (rare recompile) instead of retracing on every pair-count wiggle.
        p_cap = _P_CAP if max_n <= _P_CAP else int(np.ceil(max_n / _LANE)) * _LANE
        B = len(pairs_per_image)
        bd = np.empty((B, D, p_cap, 2), dtype=np.float32)
        bd[..., 0] = _BIG        # padding birth  -> tent == 0
        bd[..., 1] = _NEG_BIG    # padding death
        for bi, per_dim in enumerate(pairs_per_image):
            for di, pairs in enumerate(per_dim):
                if pairs:
                    arr = np.asarray(pairs, dtype=np.float32)      # (n, 2)
                    bd[bi, di, :arr.shape[0], :] = arr
        return bd, p_cap

    def forward_batch(self, xs):
        """xs: (B, H, W) -> (B, len_dim, K_max, steps) float32. One pallas_call for
        the whole batch (grid=(B, n_dims), both axes parallel)."""
        xs = xs if self.sublevel else -xs
        xs_np = np.asarray(jax.device_get(xs), dtype=np.float64)
        pairs_per_image = [self._pairs_by_dim(xs_np[i]) for i in range(xs_np.shape[0])]
        bd, _ = self._pack_bd(pairs_per_image)
        return cubical_pl_landscape(jnp.asarray(bd), k_max=self.K_max, steps=self.steps,
                                    t_min=self.t_min, t_max=self.t_max)

    def __call__(self, x):
        """x: (H, W) -> (len_dim, K_max, steps) float32 (same as the PyTorch forward)."""
        return self.forward_batch(jnp.asarray(x)[None])[0]


# ----------------------------------------------------------------------------
# Pure-NumPy reference of the original landscape loop (for validation).
# ----------------------------------------------------------------------------
def _landscape_ref(per_dim_pairs, tseq, k_max):
    D = len(per_dim_pairs)
    S = tseq.shape[0]
    out = np.zeros((D, k_max, S))
    for i, pairs in enumerate(per_dim_pairs):
        n = max(len(pairs), k_max)
        land = np.zeros((n, S))
        for j, (b, d) in enumerate(pairs):
            land[j] = np.maximum(np.minimum(tseq - b, d - tseq), 0.0)
        out[i] = -np.sort(-land, axis=0)[:k_max]
    return out


if __name__ == "__main__":
    key = jax.random.PRNGKey(0)
    module = CubicalPL()           # constr='V', interval=[0.02, 0.15], steps=32, K_max=2

    # --- single-image path (matches the PyTorch module forward) -----------------
    x = jax.random.uniform(key, (16, 16), dtype=jnp.float32)
    out = jax.block_until_ready(module(x))
    assert out.shape == (len(module.dimensions), module.K_max, module.steps), out.shape
    assert out.dtype == jnp.float32

    x_np = np.asarray(jax.device_get(x), dtype=np.float64)
    ref = _landscape_ref([_h0_pairs(x_np), _h1_pairs(x_np)],
                         np.asarray(module.tseq), module.K_max)
    np.testing.assert_allclose(np.asarray(out), ref, rtol=1e-5, atol=1e-5)

    # --- batched path (amortises the pallas_call over B images) -----------------
    k0, k1 = jax.random.split(key, 2)
    xb = jnp.stack([jax.random.uniform(k0, (16, 16), dtype=jnp.float32),
                    jax.random.uniform(k1, (16, 16), dtype=jnp.float32)])
    outb = jax.block_until_ready(module.forward_batch(xb))
    assert outb.shape == (2, len(module.dimensions), module.K_max, module.steps)
    for i in range(2):
        xi = np.asarray(jax.device_get(xb[i]), dtype=np.float64)
        refi = _landscape_ref([_h0_pairs(xi), _h1_pairs(xi)],
                              np.asarray(module.tseq), module.K_max)
        np.testing.assert_allclose(np.asarray(outb[i]), refi, rtol=1e-5, atol=1e-5)

    print("KERNEL_OK")
</pallas_src>

<mosaic_0001>
module attributes {stable_mosaic.version = 11 : i64} {
  func.func @_landscape_kernel(%arg0: i32, %arg1: i32, %arg2: memref<1x1x128x2xf32, #tpu.memory_space<vmem>>, %arg3: memref<1x1x2x128xf32, #tpu.memory_space<vmem>>) attributes {dimension_semantics = [#tpu.dimension_semantics<parallel>, #tpu.dimension_semantics<parallel>], iteration_bounds = array<i64: 1, 2>, scalar_prefetch = 0 : i64, scratch_operands = 0 : i64, tpu.core_type = #tpu.core_type<tc>, window_params = [{transform_indices = @transform_0, window_bounds = array<i64: 1, 1, 128, 2>}, {transform_indices = @transform_1, window_bounds = array<i64: 1, 1, 2, 128>}]} {
    %0 = tpu.iota {dimensions = array<i32: 1>} : vector<1x128xi32>
    %1 = arith.sitofp %0 : vector<1x128xi32> to vector<1x128xf32>
    %cst = arith.constant 0.00419354858 : f32
    %2 = vector.broadcast %cst : f32 to vector<1x128xf32>
    %3 = arith.mulf %2, %1 : vector<1x128xf32>
    %cst_0 = arith.constant 2.000000e-02 : f32
    %4 = vector.broadcast %cst_0 : f32 to vector<1x128xf32>
    %5 = arith.addf %4, %3 : vector<1x128xf32>
    %6 = tpu.iota {dimensions = array<i32: 0>} : vector<32x1xi32>
    %7 = tpu.iota {dimensions = array<i32: 0>} : vector<4x1xi32>
    %cst_1 = arith.constant 0.000000e+00 : f32
    %8 = vector.broadcast %cst_1 : f32 to vector<2x128xf32>
    %c0_i32 = arith.constant 0 : i32
    %c32_i32 = arith.constant 32 : i32
    %9 = arith.muli %c0_i32, %c32_i32 : i32
    %10 = tpu.assume_multiple %9, 32 : i32
    %c0 = arith.constant 0 : index
    %c0_2 = arith.constant 0 : index
    %11 = arith.index_cast %10 : i32 to index
    %c0_3 = arith.constant 0 : index
    %12 = vector.load %arg2[%c0, %c0_2, %11, %c0_3] : memref<1x1x128x2xf32, #tpu.memory_space<vmem>>, vector<1x1x32x2xf32>
    %13 = vector.shape_cast %12 : vector<1x1x32x2xf32> to vector<32x2xf32>
    %14 = vector.extract_strided_slice %13 {offsets = [0, 0], sizes = [32, 1], strides = [1, 1]} : vector<32x2xf32> to vector<32x1xf32>
    %15 = vector.extract_strided_slice %13 {offsets = [0, 1], sizes = [32, 1], strides = [1, 1]} : vector<32x2xf32> to vector<32x1xf32>
    %16 = vector.broadcast %5 : vector<1x128xf32> to vector<32x128xf32>
    %17 = vector.broadcast %14 : vector<32x1xf32> to vector<32x128xf32>
    %18 = arith.subf %16, %17 : vector<32x128xf32>
    %19 = vector.broadcast %15 : vector<32x1xf32> to vector<32x128xf32>
    %20 = vector.broadcast %5 : vector<1x128xf32> to vector<32x128xf32>
    %21 = arith.subf %19, %20 : vector<32x128xf32>
    %22 = arith.minimumf %18, %21 : vector<32x128xf32>
    %cst_4 = arith.constant 0.000000e+00 : f32
    %23 = vector.broadcast %cst_4 : f32 to vector<32x128xf32>
    %24 = arith.maximumf %22, %23 : vector<32x128xf32>
    %cst_5 = arith.constant dense<0xFF800000> : vector<128xf32>
    %25 = vector.multi_reduction <maximumf>, %24, %cst_5 [0] : vector<32x128xf32> to vector<128xf32>
    %26 = vector.shape_cast %25 : vector<128xf32> to vector<1x128xf32>
    %27 = vector.broadcast %26 : vector<1x128xf32> to vector<32x128xf32>
    %28 = arith.cmpf oeq, %24, %27 : vector<32x128xf32>
    %c32_i32_6 = arith.constant 32 : i32
    %29 = vector.shape_cast %6 : vector<32x1xi32> to vector<32x1xi32>
    %30 = vector.broadcast %29 : vector<32x1xi32> to vector<32x128xi32>
    %31 = vector.broadcast %c32_i32_6 : i32 to vector<32x128xi32>
    %32 = arith.select %28, %30, %31 : vector<32x128xi1>, vector<32x128xi32>
    %cst_7 = arith.constant dense<2147483647> : vector<128xi32>
    %33 = vector.multi_reduction <minsi>, %32, %cst_7 [0] : vector<32x128xi32> to vector<128xi32>
    %34 = vector.shape_cast %33 : vector<128xi32> to vector<1x128xi32>
    %35 = vector.broadcast %6 : vector<32x1xi32> to vector<32x128xi32>
    %36 = vector.broadcast %34 : vector<1x128xi32> to vector<32x128xi32>
    %37 = arith.cmpi eq, %35, %36 : vector<32x128xi32>
    %cst_8 = arith.constant 0xFF800000 : f32
    %38 = vector.broadcast %cst_8 : f32 to vector<32x128xf32>
    %39 = arith.select %37, %38, %24 : vector<32x128xi1>, vector<32x128xf32>
    %cst_9 = arith.constant dense<0xFF800000> : vector<128xf32>
    %40 = vector.multi_reduction <maximumf>, %39, %cst_9 [0] : vector<32x128xf32> to vector<128xf32>
    %41 = vector.shape_cast %40 : vector<128xf32> to vector<1x128xf32>
    %42 = tpu.concatenate %26, %41 in 0 : vector<1x128xf32>, vector<1x128xf32> -> vector<2x128xf32>
    %43 = tpu.concatenate %8, %42 in 0 : vector<2x128xf32>, vector<2x128xf32> -> vector<4x128xf32>
    %cst_10 = arith.constant dense<0xFF800000> : vector<128xf32>
    %44 = vector.multi_reduction <maximumf>, %43, %cst_10 [0] : vector<4x128xf32> to vector<128xf32>
    %45 = vector.shape_cast %44 : vector<128xf32> to vector<1x128xf32>
    %46 = vector.broadcast %45 : vector<1x128xf32> to vector<4x128xf32>
    %47 = arith.cmpf oeq, %43, %46 : vector<4x128xf32>
    %c4_i32 = arith.constant 4 : i32
    %48 = vector.shape_cast %7 : vector<4x1xi32> to vector<4x1xi32>
    %49 = vector.broadcast %48 : vector<4x1xi32> to vector<4x128xi32>
    %50 = vector.broadcast %c4_i32 : i32 to vector<4x128xi32>
    %51 = arith.select %47, %49, %50 : vector<4x128xi1>, vector<4x128xi32>
    %cst_11 = arith.constant dense<2147483647> : vector<128xi32>
    %52 = vector.multi_reduction <minsi>, %51, %cst_11 [0] : vector<4x128xi32> to vector<128xi32>
    %53 = vector.shape_cast %52 : vector<128xi32> to vector<1x128xi32>
    %54 = vector.broadcast %7 : vector<4x1xi32> to vector<4x128xi32>
    %55 = vector.broadcast %53 : vector<1x128xi32> to vector<4x128xi32>
    %56 = arith.cmpi eq, %54, %55 : vector<4x128xi32>
    %cst_12 = arith.constant 0xFF800000 : f32
    %57 = vector.broadcast %cst_12 : f32 to vector<4x128xf32>
    %58 = arith.select %56, %57, %43 : vector<4x128xi1>, vector<4x128xf32>
    %cst_13 = arith.constant dense<0xFF800000> : vector<128xf32>
    %59 = vector.multi_reduction <maximumf>, %58, %cst_13 [0] : vector<4x128xf32> to vector<128xf32>
    %60 = vector.shape_cast %59 : vector<128xf32> to vector<1x128xf32>
    %61 = tpu.concatenate %45, %60 in 0 : vector<1x128xf32>, vector<1x128xf32> -> vector<2x128xf32>
    %c1_i32 = arith.constant 1 : i32
    %c32_i32_14 = arith.constant 32 : i32
    %62 = arith.muli %c1_i32, %c32_i32_14 : i32
    %63 = tpu.assume_multiple %62, 32 : i32
    %c0_15 = arith.constant 0 : index
    %c0_16 = arith.constant 0 : index
    %64 = arith.index_cast %63 : i32 to index
    %c0_17 = arith.constant 0 : index
    %65 = vector.load %arg2[%c0_15, %c0_16, %64, %c0_17] : memref<1x1x128x2xf32, #tpu.memory_space<vmem>>, vector<1x1x32x2xf32>
    %66 = vector.shape_cast %65 : vector<1x1x32x2xf32> to vector<32x2xf32>
    %67 = vector.extract_strided_slice %66 {offsets = [0, 0], sizes = [32, 1], strides = [1, 1]} : vector<32x2xf32> to vector<32x1xf32>
    %68 = vector.extract_strided_slice %66 {offsets = [0, 1], sizes = [32, 1], strides = [1, 1]} : vector<32x2xf32> to vector<32x1xf32>
    %69 = vector.broadcast %5 : vector<1x128xf32> to vector<32x128xf32>
    %70 = vector.broadcast %67 : vector<32x1xf32> to vector<32x128xf32>
    %71 = arith.subf %69, %70 : vector<32x128xf32>
    %72 = vector.broadcast %68 : vector<32x1xf32> to vector<32x128xf32>
    %73 = vector.broadcast %5 : vector<1x128xf32> to vector<32x128xf32>
    %74 = arith.subf %72, %73 : vector<32x128xf32>
    %75 = arith.minimumf %71, %74 : vector<32x128xf32>
    %cst_18 = arith.constant 0.000000e+00 : f32
    %76 = vector.broadcast %cst_18 : f32 to vector<32x128xf32>
    %77 = arith.maximumf %75, %76 : vector<32x128xf32>
    %cst_19 = arith.constant dense<0xFF800000> : vector<128xf32>
    %78 = vector.multi_reduction <maximumf>, %77, %cst_19 [0] : vector<32x128xf32> to vector<128xf32>
    %79 = vector.shape_cast %78 : vector<128xf32> to vector<1x128xf32>
    %80 = vector.broadcast %79 : vector<1x128xf32> to vector<32x128xf32>
    %81 = arith.cmpf oeq, %77, %80 : vector<32x128xf32>
    %c32_i32_20 = arith.constant 32 : i32
    %82 = vector.shape_cast %6 : vector<32x1xi32> to vector<32x1xi32>
    %83 = vector.broadcast %82 : vector<32x1xi32> to vector<32x128xi32>
    %84 = vector.broadcast %c32_i32_20 : i32 to vector<32x128xi32>
    %85 = arith.select %81, %83, %84 : vector<32x128xi1>, vector<32x128xi32>
    %cst_21 = arith.constant dense<2147483647> : vector<128xi32>
    %86 = vector.multi_reduction <minsi>, %85, %cst_21 [0] : vector<32x128xi32> to vector<128xi32>
    %87 = vector.shape_cast %86 : vector<128xi32> to vector<1x128xi32>
    %88 = vector.broadcast %6 : vector<32x1xi32> to vector<32x128xi32>
    %89 = vector.broadcast %87 : vector<1x128xi32> to vector<32x128xi32>
    %90 = arith.cmpi eq, %88, %89 : vector<32x128xi32>
    %cst_22 = arith.constant 0xFF800000 : f32
    %91 = vector.broadcast %cst_22 : f32 to vector<32x128xf32>
    %92 = arith.select %90, %91, %77 : vector<32x128xi1>, vector<32x128xf32>
    %cst_23 = arith.constant dense<0xFF800000> : vector<128xf32>
    %93 = vector.multi_reduction <maximumf>, %92, %cst_23 [0] : vector<32x128xf32> to vector<128xf32>
    %94 = vector.shape_cast %93 : vector<128xf32> to vector<1x128xf32>
    %95 = tpu.concatenate %79, %94 in 0 : vector<1x128xf32>, vector<1x128xf32> -> vector<2x128xf32>
    %96 = tpu.concatenate %61, %95 in 0 : vector<2x128xf32>, vector<2x128xf32> -> vector<4x128xf32>
    %cst_24 = arith.constant dense<0xFF800000> : vector<128xf32>
    %97 = vector.multi_reduction <maximumf>, %96, %cst_24 [0] : vector<4x128xf32> to vector<128xf32>
    %98 = vector.shape_cast %97 : vector<128xf32> to vector<1x128xf32>
    %99 = vector.broadcast %98 : vector<1x128xf32> to vector<4x128xf32>
    %100 = arith.cmpf oeq, %96, %99 : vector<4x128xf32>
    %c4_i32_25 = arith.constant 4 : i32
    %101 = vector.shape_cast %7 : vector<4x1xi32> to vector<4x1xi32>
    %102 = vector.broadcast %101 : vector<4x1xi32> to vector<4x128xi32>
    %103 = vector.broadcast %c4_i32_25 : i32 to vector<4x128xi32>
    %104 = arith.select %100, %102, %103 : vector<4x128xi1>, vector<4x128xi32>
    %cst_26 = arith.constant dense<2147483647> : vector<128xi32>
    %105 = vector.multi_reduction <minsi>, %104, %cst_26 [0] : vector<4x128xi32> to vector<128xi32>
    %106 = vector.shape_cast %105 : vector<128xi32> to vector<1x128xi32>
    %107 = vector.broadcast %7 : vector<4x1xi32> to vector<4x128xi32>
    %108 = vector.broadcast %106 : vector<1x128xi32> to vector<4x128xi32>
    %109 = arith.cmpi eq, %107, %108 : vector<4x128xi32>
    %cst_27 = arith.constant 0xFF800000 : f32
    %110 = vector.broadcast %cst_27 : f32 to vector<4x128xf32>
    %111 = arith.select %109, %110, %96 : vector<4x128xi1>, vector<4x128xf32>
    %cst_28 = arith.constant dense<0xFF800000> : vector<128xf32>
    %112 = vector.multi_reduction <maximumf>, %111, %cst_28 [0] : vector<4x128xf32> to vector<128xf32>
    %113 = vector.shape_cast %112 : vector<128xf32> to vector<1x128xf32>
    %114 = tpu.concatenate %98, %113 in 0 : vector<1x128xf32>, vector<1x128xf32> -> vector<2x128xf32>
    %c2_i32 = arith.constant 2 : i32
    %c32_i32_29 = arith.constant 32 : i32
    %115 = arith.muli %c2_i32, %c32_i32_29 : i32
    %116 = tpu.assume_multiple %115, 32 : i32
    %c0_30 = arith.constant 0 : index
    %c0_31 = arith.constant 0 : index
    %117 = arith.index_cast %116 : i32 to index
    %c0_32 = arith.constant 0 : index
    %118 = vector.load %arg2[%c0_30, %c0_31, %117, %c0_32] : memref<1x1x128x2xf32, #tpu.memory_space<vmem>>, vector<1x1x32x2xf32>
    %119 = vector.shape_cast %118 : vector<1x1x32x2xf32> to vector<32x2xf32>
    %120 = vector.extract_strided_slice %119 {offsets = [0, 0], sizes = [32, 1], strides = [1, 1]} : vector<32x2xf32> to vector<32x1xf32>
    %121 = vector.extract_strided_slice %119 {offsets = [0, 1], sizes = [32, 1], strides = [1, 1]} : vector<32x2xf32> to vector<32x1xf32>
    %122 = vector.broadcast %5 : vector<1x128xf32> to vector<32x128xf32>
    %123 = vector.broadcast %120 : vector<32x1xf32> to vector<32x128xf32>
    %124 = arith.subf %122, %123 : vector<32x128xf32>
    %125 = vector.broadcast %121 : vector<32x1xf32> to vector<32x128xf32>
    %126 = vector.broadcast %5 : vector<1x128xf32> to vector<32x128xf32>
    %127 = arith.subf %125, %126 : vector<32x128xf32>
    %128 = arith.minimumf %124, %127 : vector<32x128xf32>
    %cst_33 = arith.constant 0.000000e+00 : f32
    %129 = vector.broadcast %cst_33 : f32 to vector<32x128xf32>
    %130 = arith.maximumf %128, %129 : vector<32x128xf32>
    %cst_34 = arith.constant dense<0xFF800000> : vector<128xf32>
    %131 = vector.multi_reduction <maximumf>, %130, %cst_34 [0] : vector<32x128xf32> to vector<128xf32>
    %132 = vector.shape_cast %131 : vector<128xf32> to vector<1x128xf32>
    %133 = vector.broadcast %132 : vector<1x128xf32> to vector<32x128xf32>
    %134 = arith.cmpf oeq, %130, %133 : vector<32x128xf32>
    %c32_i32_35 = arith.constant 32 : i32
    %135 = vector.shape_cast %6 : vector<32x1xi32> to vector<32x1xi32>
    %136 = vector.broadcast %135 : vector<32x1xi32> to vector<32x128xi32>
    %137 = vector.broadcast %c32_i32_35 : i32 to vector<32x128xi32>
    %138 = arith.select %134, %136, %137 : vector<32x128xi1>, vector<32x128xi32>
    %cst_36 = arith.constant dense<2147483647> : vector<128xi32>
    %139 = vector.multi_reduction <minsi>, %138, %cst_36 [0] : vector<32x128xi32> to vector<128xi32>
    %140 = vector.shape_cast %139 : vector<128xi32> to vector<1x128xi32>
    %141 = vector.broadcast %6 : vector<32x1xi32> to vector<32x128xi32>
    %142 = vector.broadcast %140 : vector<1x128xi32> to vector<32x128xi32>
    %143 = arith.cmpi eq, %141, %142 : vector<32x128xi32>
    %cst_37 = arith.constant 0xFF800000 : f32
    %144 = vector.broadcast %cst_37 : f32 to vector<32x128xf32>
    %145 = arith.select %143, %144, %130 : vector<32x128xi1>, vector<32x128xf32>
    %cst_38 = arith.constant dense<0xFF800000> : vector<128xf32>
    %146 = vector.multi_reduction <maximumf>, %145, %cst_38 [0] : vector<32x128xf32> to vector<128xf32>
    %147 = vector.shape_cast %146 : vector<128xf32> to vector<1x128xf32>
    %148 = tpu.concatenate %132, %147 in 0 : vector<1x128xf32>, vector<1x128xf32> -> vector<2x128xf32>
    %149 = tpu.concatenate %114, %148 in 0 : vector<2x128xf32>, vector<2x128xf32> -> vector<4x128xf32>
    %cst_39 = arith.constant dense<0xFF800000> : vector<128xf32>
    %150 = vector.multi_reduction <maximumf>, %149, %cst_39 [0] : vector<4x128xf32> to vector<128xf32>
    %151 = vector.shape_cast %150 : vector<128xf32> to vector<1x128xf32>
    %152 = vector.broadcast %151 : vector<1x128xf32> to vector<4x128xf32>
    %153 = arith.cmpf oeq, %149, %152 : vector<4x128xf32>
    %c4_i32_40 = arith.constant 4 : i32
    %154 = vector.shape_cast %7 : vector<4x1xi32> to vector<4x1xi32>
    %155 = vector.broadcast %154 : vector<4x1xi32> to vector<4x128xi32>
    %156 = vector.broadcast %c4_i32_40 : i32 to vector<4x128xi32>
    %157 = arith.select %153, %155, %156 : vector<4x128xi1>, vector<4x128xi32>
    %cst_41 = arith.constant dense<2147483647> : vector<128xi32>
    %158 = vector.multi_reduction <minsi>, %157, %cst_41 [0] : vector<4x128xi32> to vector<128xi32>
    %159 = vector.shape_cast %158 : vector<128xi32> to vector<1x128xi32>
    %160 = vector.broadcast %7 : vector<4x1xi32> to vector<4x128xi32>
    %161 = vector.broadcast %159 : vector<1x128xi32> to vector<4x128xi32>
    %162 = arith.cmpi eq, %160, %161 : vector<4x128xi32>
    %cst_42 = arith.constant 0xFF800000 : f32
    %163 = vector.broadcast %cst_42 : f32 to vector<4x128xf32>
    %164 = arith.select %162, %163, %149 : vector<4x128xi1>, vector<4x128xf32>
    %cst_43 = arith.constant dense<0xFF800000> : vector<128xf32>
    %165 = vector.multi_reduction <maximumf>, %164, %cst_43 [0] : vector<4x128xf32> to vector<128xf32>
    %166 = vector.shape_cast %165 : vector<128xf32> to vector<1x128xf32>
    %167 = tpu.concatenate %151, %166 in 0 : vector<1x128xf32>, vector<1x128xf32> -> vector<2x128xf32>
    %c3_i32 = arith.constant 3 : i32
    %c32_i32_44 = arith.constant 32 : i32
    %168 = arith.muli %c3_i32, %c32_i32_44 : i32
    %169 = tpu.assume_multiple %168, 32 : i32
    %c0_45 = arith.constant 0 : index
    %c0_46 = arith.constant 0 : index
    %170 = arith.index_cast %169 : i32 to index
    %c0_47 = arith.constant 0 : index
    %171 = vector.load %arg2[%c0_45, %c0_46, %170, %c0_47] : memref<1x1x128x2xf32, #tpu.memory_space<vmem>>, vector<1x1x32x2xf32>
    %172 = vector.shape_cast %171 : vector<1x1x32x2xf32> to vector<32x2xf32>
    %173 = vector.extract_strided_slice %172 {offsets = [0, 0], sizes = [32, 1], strides = [1, 1]} : vector<32x2xf32> to vector<32x1xf32>
    %174 = vector.extract_strided_slice %172 {offsets = [0, 1], sizes = [32, 1], strides = [1, 1]} : vector<32x2xf32> to vector<32x1xf32>
    %175 = vector.broadcast %5 : vector<1x128xf32> to vector<32x128xf32>
    %176 = vector.broadcast %173 : vector<32x1xf32> to vector<32x128xf32>
    %177 = arith.subf %175, %176 : vector<32x128xf32>
    %178 = vector.broadcast %174 : vector<32x1xf32> to vector<32x128xf32>
    %179 = vector.broadcast %5 : vector<1x128xf32> to vector<32x128xf32>
    %180 = arith.subf %178, %179 : vector<32x128xf32>
    %181 = arith.minimumf %177, %180 : vector<32x128xf32>
    %cst_48 = arith.constant 0.000000e+00 : f32
    %182 = vector.broadcast %cst_48 : f32 to vector<32x128xf32>
    %183 = arith.maximumf %181, %182 : vector<32x128xf32>
    %cst_49 = arith.constant dense<0xFF800000> : vector<128xf32>
    %184 = vector.multi_reduction <maximumf>, %183, %cst_49 [0] : vector<32x128xf32> to vector<128xf32>
    %185 = vector.shape_cast %184 : vector<128xf32> to vector<1x128xf32>
    %186 = vector.broadcast %185 : vector<1x128xf32> to vector<32x128xf32>
    %187 = arith.cmpf oeq, %183, %186 : vector<32x128xf32>
    %c32_i32_50 = arith.constant 32 : i32
    %188 = vector.shape_cast %6 : vector<32x1xi32> to vector<32x1xi32>
    %189 = vector.broadcast %188 : vector<32x1xi32> to vector<32x128xi32>
    %190 = vector.broadcast %c32_i32_50 : i32 to vector<32x128xi32>
    %191 = arith.select %187, %189, %190 : vector<32x128xi1>, vector<32x128xi32>
    %cst_51 = arith.constant dense<2147483647> : vector<128xi32>
    %192 = vector.multi_reduction <minsi>, %191, %cst_51 [0] : vector<32x128xi32> to vector<128xi32>
    %193 = vector.shape_cast %192 : vector<128xi32> to vector<1x128xi32>
    %194 = vector.broadcast %6 : vector<32x1xi32> to vector<32x128xi32>
    %195 = vector.broadcast %193 : vector<1x128xi32> to vector<32x128xi32>
    %196 = arith.cmpi eq, %194, %195 : vector<32x128xi32>
    %cst_52 = arith.constant 0xFF800000 : f32
    %197 = vector.broadcast %cst_52 : f32 to vector<32x128xf32>
    %198 = arith.select %196, %197, %183 : vector<32x128xi1>, vector<32x128xf32>
    %cst_53 = arith.constant dense<0xFF800000> : vector<128xf32>
    %199 = vector.multi_reduction <maximumf>, %198, %cst_53 [0] : vector<32x128xf32> to vector<128xf32>
    %200 = vector.shape_cast %199 : vector<128xf32> to vector<1x128xf32>
    %201 = tpu.concatenate %185, %200 in 0 : vector<1x128xf32>, vector<1x128xf32> -> vector<2x128xf32>
    %202 = tpu.concatenate %167, %201 in 0 : vector<2x128xf32>, vector<2x128xf32> -> vector<4x128xf32>
    %cst_54 = arith.constant dense<0xFF800000> : vector<128xf32>
    %203 = vector.multi_reduction <maximumf>, %202, %cst_54 [0] : vector<4x128xf32> to vector<128xf32>
    %204 = vector.shape_cast %203 : vector<128xf32> to vector<1x128xf32>
    %205 = vector.broadcast %204 : vector<1x128xf32> to vector<4x128xf32>
    %206 = arith.cmpf oeq, %202, %205 : vector<4x128xf32>
    %c4_i32_55 = arith.constant 4 : i32
    %207 = vector.shape_cast %7 : vector<4x1xi32> to vector<4x1xi32>
    %208 = vector.broadcast %207 : vector<4x1xi32> to vector<4x128xi32>
    %209 = vector.broadcast %c4_i32_55 : i32 to vector<4x128xi32>
    %210 = arith.select %206, %208, %209 : vector<4x128xi1>, vector<4x128xi32>
    %cst_56 = arith.constant dense<2147483647> : vector<128xi32>
    %211 = vector.multi_reduction <minsi>, %210, %cst_56 [0] : vector<4x128xi32> to vector<128xi32>
    %212 = vector.shape_cast %211 : vector<128xi32> to vector<1x128xi32>
    %213 = vector.broadcast %7 : vector<4x1xi32> to vector<4x128xi32>
    %214 = vector.broadcast %212 : vector<1x128xi32> to vector<4x128xi32>
    %215 = arith.cmpi eq, %213, %214 : vector<4x128xi32>
    %cst_57 = arith.constant 0xFF800000 : f32
    %216 = vector.broadcast %cst_57 : f32 to vector<4x128xf32>
    %217 = arith.select %215, %216, %202 : vector<4x128xi1>, vector<4x128xf32>
    %cst_58 = arith.constant dense<0xFF800000> : vector<128xf32>
    %218 = vector.multi_reduction <maximumf>, %217, %cst_58 [0] : vector<4x128xf32> to vector<128xf32>
    %219 = vector.shape_cast %218 : vector<128xf32> to vector<1x128xf32>
    %220 = tpu.concatenate %204, %219 in 0 : vector<1x128xf32>, vector<1x128xf32> -> vector<2x128xf32>
    %c4_i32_59 = arith.constant 4 : i32
    %221 = vector.shape_cast %220 : vector<2x128xf32> to vector<1x1x2x128xf32>
    %c0_60 = arith.constant 0 : index
    %c0_61 = arith.constant 0 : index
    %c0_62 = arith.constant 0 : index
    %c0_63 = arith.constant 0 : index
    %222 = vector.load %arg3[%c0_60, %c0_61, %c0_62, %c0_63] : memref<1x1x2x128xf32, #tpu.memory_space<vmem>>, vector<1x1x2x128xf32>
    tpu.vector_store %arg3[%c0_60, %c0_61, %c0_62, %c0_63], %221 {strides = array<i32>} : memref<1x1x2x128xf32, #tpu.memory_space<vmem>>, vector<1x1x2x128xf32>,
    return
  }
  func.func @transform_0(%arg0: i32, %arg1: i32) -> (i32, i32, i32, i32) {
    %c0_i32 = arith.constant 0 : i32
    %c0_i32_0 = arith.constant 0 : i32
    %c0_i32_1 = arith.constant 0 : i32
    return %arg0, %arg1, %c0_i32, %c0_i32_0 : i32, i32, i32, i32
  }
  func.func @transform_1(%arg0: i32, %arg1: i32) -> (i32, i32, i32, i32) {
    %c0_i32 = arith.constant 0 : i32
    %c0_i32_0 = arith.constant 0 : i32
    %c0_i32_1 = arith.constant 0 : i32
    return %arg0, %arg1, %c0_i32, %c0_i32_0 : i32, i32, i32, i32
  }
}

</mosaic_0001>

<bundles_post_ra>
// kernel: run.1
= control target key start
LH: loop header
LB: loop body
LE: loop exit
PB: predicated region body
PF: predicated region fallthrough
CT: control target
= control target key end

     0   :  { %6 = vsyncpa [#allocation3], 0  ;;  %s1359_s0 = inlined_call_operand.vmem [shape: f32[1,2,128,2], index: 0, kind: input, shape index: {}]   ;;  %s1360_s1 = inlined_call_operand.hbm [shape: f32[1,2,2,128], index: 1, kind: output, shape index: {}]  }
   0x1   :  { %8 = vsyncpa [#allocation3 + $0x1], 0  ;;  %s1001_s6 = smov 0   ;;  %s1003_s7 = smov 0  }
   0x2   :  { %s1005_s8 = smov 0   ;;  %s1007_s9 = smov 0  }
   0x3   :  { %s1009_s10 = smov 0   ;;  %s1011_s11 = smov 0  }
   0x4 LB: > { %s810_s12 = sadd.s32 4294967295, %s986_s11   ;;  %s811_s13 = sadd.s32 4294967294, %s986_s11   ;;  %s986_s11 = sphi %s1011_s11, %s14_s11   ;;  %s982_s10 = sphi %s1009_s10, %s1367_s10   ;;  %s978_s9 = sphi %s1007_s9, %s1366_s9   ;;  %s974_s8 = sphi %s1005_s8, %s1365_s8   ;;  %s970_s7 = sphi %s1003_s7, %s1364_s7   ;;  %s966_s6 = sphi %s1001_s6, %s1363_s6  }
   0x5   : > { %s23_s14 = sadd.s32 1, %s982_s10  ;;  %s63_s15 = sadd.s32 1, %s974_s8 }
   0x6   : > { %p24_p0 = scmp.ge.s32.totalorder %s23_s14, 2  ;;  %p73_p1 = scmp.ne.s32.totalorder %s974_s8, %s970_s7 }
   0x7   : > { %p74_p2 = scmp.eq.s32.totalorder %s810_s12, 1  ;;  %p79_p3 = scmp.ne.s32.totalorder %s970_s7, %s966_s6 }
   0x8   : > { %s1369_s14 = smov (%p24_p0, %s23_s14), 0  ;;  %p80_p5 = scmp.eq.s32.totalorder %s811_s13, 1 }
   0x9   : > { %p1041_p4 = por %p74_p2, %p73_p1  ;;  %s59_s17 = ssub.s32 %s982_s10, %s1369_s14 }
   0xa   : > { %p814_p6 = scmp.ge.s32.totalorder %s986_s11, 1  ;;  %p61_p7 = scmp.eq.s32.totalorder %s59_s17, 0 }
   0xb   : > { %p1048_p8 = por %p80_p5, %p79_p3  ;;  %p110_p9 = scmp.lt.s32.totalorder %s986_s11, 3 }
   0xc   : > { %s1054_s19 = scalar_select %p61_p7, %s974_s8, %s63_s15  }
   0xd   : > { %p111_p10 = pnand %p814_p6, %p110_p9 }
   0xe   : > { %p136_p11 = scmp.lt.s32.totalorder (!%p111_p10), %s978_s9, 1  ;;  %v988_v0 = vmov (!%p111_p10), 0   ;;  %v989_v5 = vmov (!%p111_p10), 1   ;;  %v143_v18 = vlaneseq (!%p111_p10)  ;;  %s131_s25 = sand.u32 (!%p111_p10), 1, %s970_s7  }
   0xf   : > { %114 = sbr.rel (%p111_p10) target bundleno = 425 (0x1a9), region = 24  ;;  %893 = vset.pattern.permute.xlu1 (!%p111_p10), %v988_v0  ;;  %892 = vset.pattern.permute.xlu0 (!%p111_p10), %v988_v0  ;;  %s815_s26 = sshll.u32 (!%p111_p10), %s131_s25, 1 }
  0x10   : > { %v144_v19 = vand.u32 (!%p111_p10), 127, %v143_v18  ;;  %v1103_v61 = vshrl.u32 (!%p111_p10), %v143_v18, 7  ;;  %s831_s27 = sshll.u32 (!%p111_p10), %s978_s9, 5  ;;  %s133_s28 = scalar_lea.vmem (!%p111_p10), [#allocation2], %s815_s26 }
  0x11   : > { %s732_s29 = sshll.u32 (!%p111_p10), %s133_s28, 4  ;;  %s1311_s3 = scalar_lea.hbm (!%p111_p10), %s1360_s1, %s831_s27  ;;  %s1313_s29 = int_to_ptr.vmem [resolvable:$true] %s732_s29 }
  0x12   : > { %v145_v20 = vcvt.s32.f32 (!%p111_p10), %v144_v19  ;;  %s717_s4 = scalar_lea.sflag (!%p111_p10), [#allocation3], %s131_s25  ;;  %s908_s5 = scalar_lea.vmem (!%p111_p10), %s1313_s29, 32 }
  0x13   : > { %p909_p12 = scmp.ne.s32.totalorder (!%p111_p10), %s1313_s29, %s908_s5 }
  0x14   : > { %v146_v23 = vmul.f32 (!%p111_p10), 0.0041935486, %v145_v20 }
  0x15   : > { %p910_p13 = pnand (!%p111_p10), %p909_p12, %p1041_p4 }
  0x16   : > { %s137_s20 = scalar_select %p136_p11, %s978_s9, 1  ;;  %v1079_v26 = vadd.f32 0.02, %v146_v23 }
  0x17   : > { %p911_p0 = pneg %p910_p13  ;;  %s990_s9 = smov [#allocation2]  }
  0x18   : > { %s834_s21 = sshll.u32 %s137_s20, 7  ;;  %s912_s12 = sshll.u32 %s990_s9, 4  ;;  %s913_s12 = int_to_ptr.vmem [resolvable:$false] %s912_s12 }
  0x19   : > { %s1061_s24 = scalar_lea.vmem %s1359_s0, %s834_s21  ;;  %s914_s13 = scalar_lea.vmem %s913_s12, 64 }
  0x1a   : > { %v155_v1 = vld [vmem:[%s1061_s24 + $0x10] sm:$0xff]  ;;  %v153_v2 = vld [vmem:[%s1061_s24] sm:$0xff]  ;;  %v156_v3 = vld [vmem:[%s1061_s24 + $0x18] sm:$0xff]  ;;  %p915_p1 = scmp.lt.s32.totalorder %s1313_s29, %s913_s12  ;;  %p916_p2 = scmp.lt.s32.totalorder %s914_s13, %s908_s5 }
  0x1b   : > { %169 = vperm.xlu1 %893, %v155_v1   ;;  %159 = vperm.xlu0 %892, %v153_v2   ;;  %v154_v4 = vld [vmem:[%s1061_s24 + $0x8] sm:$0xff]  ;;  %v818_v6 = vld [vmem:[%s1061_s24 + $0x20] sm:$0xff]  ;;  %v820_v8 = vld [vmem:[%s1061_s24 + $0x30] sm:$0xff] }
  0x1c   : > { %v819_v7 = vld [vmem:[%s1061_s24 + $0x28] sm:$0xff]  ;;  %v821_v9 = vld [vmem:[%s1061_s24 + $0x38] sm:$0xff]  ;;  %v822_v11 = vld [vmem:[%s1061_s24 + $0x40] sm:$0xff]  ;;  %p917_p3 = por %p916_p2, %p915_p1 }
  0x1d   : > { %v823_v10 = vld [vmem:[%s1061_s24 + $0x48] sm:$0xff]  ;;  %v825_v12 = vld [vmem:[%s1061_s24 + $0x58] sm:$0xff]  ;;  %v824_v13 = vld [vmem:[%s1061_s24 + $0x50] sm:$0xff] }
  0x1e   : > { %v827_v14 = vld [vmem:[%s1061_s24 + $0x68] sm:$0xff]  ;;  %v826_v15 = vld [vmem:[%s1061_s24 + $0x60] sm:$0xff]  ;;  %v829_v16 = vld [vmem:[%s1061_s24 + $0x78] sm:$0xff]  ;;  %p918_p5 = pnand %p917_p3, %p911_p0 }
  0x1f   : > { %174 = vperm.xlu1 %893, %v156_v3   ;;  %164 = vperm.xlu0 %892, %v154_v4   ;;  %v828_v17 = vld [vmem:[%s1061_s24 + $0x70] sm:$0xff] }
  0x23   : > { %895 = vset.pattern.permute.xlu1 %v989_v5  ;;  %894 = vset.pattern.permute.xlu0 %v989_v5 }
  0x24   : > { %186 = vperm.xlu1 %895, %v154_v4   ;;  %182 = vperm.xlu0 %894, %v153_v2  }
  0x28   : > { %190 = vperm.xlu1 %895, %v155_v1   ;;  %194 = vperm.xlu0 %894, %v156_v3  }
  0x2c   : > { %896 = vset.pattern.permute.xlu1 %v988_v0  ;;  %897 = vset.pattern.permute.xlu0 %v988_v0 }
  0x2d   : > { %302 = vperm.xlu1 %896, %v818_v6   ;;  %307 = vperm.xlu0 %897, %v819_v7  }
  0x31   : > { %312 = vperm.xlu1 %896, %v820_v8   ;;  %898 = vset.pattern.permute.xlu0 %v989_v5 }
  0x32   : > { %325 = vperm.xlu0 %898, %v818_v6   ;;  %v1110_v6 = vadd.s32 8, %v1103_v61 }
  0x35   : > { %317 = vperm.xlu1 %896, %v821_v9  }
  0x36   : > { %337 = vperm.xlu0 %898, %v821_v9  }
  0x39   : > { %899 = vset.pattern.permute.xlu1 %v989_v5 }
  0x3a   : > { %329 = vperm.xlu1 %899, %v819_v7   ;;  %901 = vset.pattern.permute.xlu0 %v988_v0  ;;  %v1113_v7 = vadd.s32 16, %v1103_v61 }
  0x3b   : > { %447 = vperm.xlu0 %901, %v823_v10  }
  0x3e   : > { %333 = vperm.xlu1 %899, %v820_v8   ;;  %v1116_v8 = vadd.s32 24, %v1103_v61 }
  0x3f   : > { %902 = vset.pattern.permute.xlu0 %v989_v5 }
  0x40   : > { %465 = vperm.xlu0 %902, %v822_v11  }
  0x42   : > { %900 = vset.pattern.permute.xlu1 %v988_v0 }
  0x43   : > { %442 = vperm.xlu1 %900, %v822_v11  }
  0x44   : > { %477 = vperm.xlu0 %902, %v825_v12  }
  0x47   : > { %452 = vperm.xlu1 %900, %v824_v13  }
  0x48   : > { %905 = vset.pattern.permute.xlu0 %v988_v0 }
  0x49   : > { %587 = vperm.xlu0 %905, %v827_v14  }
  0x4b   : > { %457 = vperm.xlu1 %900, %v825_v12  }
  0x4d   : > { %906 = vset.pattern.permute.xlu0 %v989_v5 }
  0x4e   : > { %605 = vperm.xlu0 %906, %v826_v15  }
  0x4f   : > { %903 = vset.pattern.permute.xlu1 %v989_v5 }
  0x50   : > { %469 = vperm.xlu1 %903, %v823_v10  }
  0x52   : > { %617 = vperm.xlu0 %906, %v829_v16  }
  0x54   : > { %473 = vperm.xlu1 %903, %v824_v13  }
  0x58   : > { %904 = vset.pattern.permute.xlu1 %v988_v0 }
  0x59   : > { %582 = vperm.xlu1 %904, %v826_v15  }
  0x5d   : > { %592 = vperm.xlu1 %904, %v828_v17  }
  0x61   : > { %597 = vperm.xlu1 %904, %v829_v16  }
  0x65   : > { %907 = vset.pattern.permute.xlu1 %v989_v5 }
  0x66   : > { %609 = vperm.xlu1 %907, %v827_v14  }
  0x6a   : > { %613 = vperm.xlu1 %907, %v828_v17  }
  0x9a   : > { %v170_v21 = vpop.permute.xlu1 %169  ;;  %v160_v22 = vpop.permute.xlu0 %159 }
  0x9b   : > { %v177_v29 = vsub.f32 %v1079_v26, %v160_v22  ;;  %v179_v37 = vsub.f32 %v1079_v26, %v170_v21 }
  0x9e   : > { %v175_v24 = vpop.permute.xlu1 %174  ;;  %v165_v25 = vpop.permute.xlu0 %164 }
  0x9f   : > { %v178_v30 = vsub.f32 %v1079_v26, %v165_v25  ;;  %v180_v38 = vsub.f32 %v1079_v26, %v175_v24 }
  0xa3   : > { %v187_v27 = vpop.permute.xlu1 %186  ;;  %v183_v28 = vpop.permute.xlu0 %182 }
  0xa4   : > { %v198_v31 = vsub.f32 %v187_v27, %v1079_v26  ;;  %v197_v32 = vsub.f32 %v183_v28, %v1079_v26 }
  0xa6   : > { %v202_v33 = vmin.f32 %v178_v30, %v198_v31  ;;  %v201_v34 = vmin.f32 %v177_v29, %v197_v32 }
  0xa7   : > { %v191_v35 = vpop.permute.xlu1 %190  ;;  %v195_v36 = vpop.permute.xlu0 %194 }
  0xa8   : > { %v199_v39 = vsub.f32 %v191_v35, %v1079_v26  ;;  %v200_v40 = vsub.f32 %v195_v36, %v1079_v26  ;;  %v1089_v41 = vmax.f32 %v202_v33, 0.0  ;;  %v1091_v42 = vmax.f32 %v201_v34, 0.0 }
  0xaa   : > { %v203_v43 = vmin.f32 %v179_v37, %v199_v39  ;;  %v204_v44 = vmin.f32 %v180_v38, %v200_v40  ;;  %v209_v49 = vmax.f32 %v1091_v42, %v1089_v41 }
  0xac   : > { %v1093_v45 = vmax.f32 %v203_v43, 0.0  ;;  %v1095_v46 = vmax.f32 %v204_v44, 0.0  ;;  %v303_v47 = vpop.permute.xlu1 %302  ;;  %v308_v48 = vpop.permute.xlu0 %307 }
  0xad   : > { %v320_v57 = vsub.f32 %v1079_v26, %v303_v47  ;;  %v321_v63 = vsub.f32 %v1079_v26, %v308_v48 }
  0xae   : > { %v210_v50 = vmax.f32 %v1093_v45, %v1095_v46 }
  0xb0   : > { %v211_v51 = vmax.f32 %v209_v49, %v210_v50  ;;  %v313_v52 = vpop.permute.xlu1 %312 }
  0xb1   : > { %v326_v53 = vpop.permute.xlu0 %325  ;;  %v322_v11 = vsub.f32 %v1079_v26, %v313_v52 }
  0xb2   : > { %v212_v54 = vrot.slane %v211_v51, 4  ;;  %v340_v58 = vsub.f32 %v326_v53, %v1079_v26 }
  0xb4   : > { %v213_v55 = vmax.f32 %v211_v51, %v212_v54  ;;  %v318_v56 = vpop.permute.xlu1 %317  ;;  %v344_v2 = vmin.f32 %v320_v57, %v340_v58 }
  0xb5   : > { %v338_v60 = vpop.permute.xlu0 %337  ;;  %v323_v0 = vsub.f32 %v1079_v26, %v318_v56 }
  0xb6   : > { %v214_v59 = vrot.slane %v213_v55, 2  ;;  %v343_v3 = vsub.f32 %v338_v60, %v1079_v26  ;;  %v1121_v12 = vmax.f32 %v344_v2, 0.0 }
  0xb8   : > { %v215_v62 = vmax.f32 %v213_v55, %v214_v59  ;;  %v347_v14 = vmin.f32 %v323_v0, %v343_v3 }
  0xb9   : > { %v330_v1 = vpop.permute.xlu1 %329 }
  0xba   : > { %v216_v4 = vrot.slane %v215_v62, 1  ;;  %v341_v5 = vsub.f32 %v330_v1, %v1079_v26  ;;  %v448_v21 = vpop.permute.xlu0 %447  ;;  %v1138_v25 = vmax.f32 %v347_v14, 0.0 }
  0xbb   : > { %v461_v49 = vsub.f32 %v1079_v26, %v448_v21 }
  0xbc   : > { %v1118_v9 = vmax.f32 %v215_v62, %v216_v4  ;;  %v345_v10 = vmin.f32 %v321_v63, %v341_v5 }
  0xbd   : > { %v334_v13 = vpop.permute.xlu1 %333 }
  0xbe   : > { %vm218_vm0 = vcmp.eq.f32.partialorder %v1091_v42, %v1118_v9  ;;  %vm219_vm1 = vcmp.eq.f32.partialorder %v1089_v41, %v1118_v9  ;;  %vm220_vm2 = vcmp.eq.f32.partialorder %v1093_v45, %v1118_v9  ;;  %vm221_vm3 = vcmp.eq.f32.partialorder %v1095_v46, %v1118_v9 }
  0xbf   : > { %v222_v15 = vsel %vm218_vm0, %v1103_v61, 32  ;;  %v223_v16 = vsel %vm219_vm1, %v1110_v6, 32  ;;  %v224_v17 = vsel %vm220_vm2, %v1113_v7, 32  ;;  %v225_v18 = vsel %vm221_vm3, %v1116_v8, 32  ;;  %v466_v34 = vpop.permute.xlu0 %465 }
  0xc0   : > { %vm226_vm4 = vcmp.lt.s32.totalorder %v222_v15, %v223_v16  ;;  %vm228_vm5 = vcmp.lt.s32.totalorder %v224_v17, %v225_v18  ;;  %v1135_v19 = vmax.f32 %v345_v10, 0.0  ;;  %v342_v20 = vsub.f32 %v334_v13, %v1079_v26 }
  0xc1   : > { %v227_v22 = vsel %vm226_vm4, %v222_v15, %v223_v16  ;;  %v229_v23 = vsel %vm228_vm5, %v224_v17, %v225_v18  ;;  %v480_v50 = vsub.f32 %v466_v34, %v1079_v26  ;;  %vm258_vm5 = vcmask 1040384  }
  0xc2   : > { %vm230_vm6 = vcmp.lt.s32.totalorder %v227_v22, %v229_v23  ;;  %v346_v24 = vmin.f32 %v322_v11, %v342_v20  ;;  %v443_v27 = vpop.permute.xlu1 %442  ;;  %v352_v30 = vmax.f32 %v1121_v12, %v1135_v19 }
  0xc3   : > { %v231_v28 = vsel %vm230_vm6, %v227_v22, %v229_v23  ;;  %v478_v47 = vpop.permute.xlu0 %477  ;;  %v460_v52 = vsub.f32 %v1079_v26, %v443_v27 }
  0xc4   : > { %v232_v29 = vrot.slane %v231_v28, 4  ;;  %v1142_v31 = vmax.f32 %v346_v24, 0.0  ;;  %v483_v55 = vsub.f32 %v478_v47, %v1079_v26 }
  0xc5   : > { %v484_v2 = vmin.f32 %v460_v52, %v480_v50 }
  0xc6   : > { %vm233_vm7 = vcmp.lt.s32.totalorder %v231_v28, %v232_v29  ;;  %v353_v32 = vmax.f32 %v1142_v31, %v1138_v25  ;;  %v453_v33 = vpop.permute.xlu1 %452 }
  0xc7   : > { %v234_v35 = vsel %vm233_vm7, %v231_v28, %v232_v29  ;;  %v462_v1 = vsub.f32 %v1079_v26, %v453_v33  ;;  %vm263_vm7 = vcmask 1041408  }
  0xc8   : > { %v235_v36 = vrot.slane %v234_v35, 2  ;;  %v354_v37 = vmax.f32 %v352_v30, %v353_v32  ;;  %v588_v34 = vpop.permute.xlu0 %587 }
  0xca   : > { %vm236_vm8 = vcmp.lt.s32.totalorder %v234_v35, %v235_v36  ;;  %v355_v38 = vrot.slane %v354_v37, 4  ;;  %v458_v39 = vpop.permute.xlu1 %457 }
  0xcb   : > { %v237_v40 = vsel %vm236_vm8, %v234_v35, %v235_v36  ;;  %v463_v53 = vsub.f32 %v1079_v26, %v458_v39  ;;  %vm265_vm8 = vcmask 1043456  }
  0xcc   : > { %v238_v43 = vrot.slane %v237_v40, 1  ;;  %v356_v44 = vmax.f32 %v354_v37, %v355_v38 }
  0xcd   : > { %v487_v4 = vmin.f32 %v463_v53, %v483_v55  ;;  %v606_v50 = vpop.permute.xlu0 %605 }
  0xce   : > { %vm239_vm9 = vcmp.lt.s32.totalorder %v237_v40, %v238_v43  ;;  %v357_v48 = vrot.slane %v356_v44, 2 }
  0xcf   : > { %v240_v51 = vsel %vm239_vm9, %v237_v40, %v238_v43  ;;  %v470_v54 = vpop.permute.xlu1 %469  ;;  %v1168_v15 = vmax.f32 %v487_v4, 0.0 }
  0xd0   : > { %vm241_vm10 = vcmp.eq.s32.totalorder %v1103_v61, %v240_v51  ;;  %vm242_vm11 = vcmp.eq.s32.totalorder %v1110_v6, %v240_v51  ;;  %vm243_vm12 = vcmp.eq.s32.totalorder %v1113_v7, %v240_v51  ;;  %vm244_vm13 = vcmp.eq.s32.totalorder %v1116_v8, %v240_v51 }
  0xd1   : > { %v245_v56 = vsel %vm241_vm10, -inf, %v1091_v42  ;;  %v246_v57 = vsel %vm242_vm11, -inf, %v1089_v41  ;;  %v247_v58 = vsel %vm243_vm12, -inf, %v1093_v45  ;;  %v248_v59 = vsel %vm244_vm13, -inf, %v1095_v46 }
  0xd2   : > { %v249_v60 = vmax.f32 %v245_v56, %v246_v57  ;;  %v250_v62 = vmax.f32 %v247_v58, %v248_v59  ;;  %v358_v63 = vmax.f32 %v356_v44, %v357_v48  ;;  %v481_v0 = vsub.f32 %v470_v54, %v1079_v26 }
  0xd3   : > { %v474_v3 = vpop.permute.xlu1 %473  ;;  %v1166_v46 = vmax.f32 %v484_v2, 0.0 }
  0xd4   : > { %v251_v5 = vmax.f32 %v249_v60, %v250_v62  ;;  %v359_v10 = vrot.slane %v358_v63, 1  ;;  %v485_v11 = vmin.f32 %v461_v49, %v481_v0  ;;  %v482_v42 = vsub.f32 %v474_v3, %v1079_v26  ;;  %v618_v60 = vpop.permute.xlu0 %617 }
  0xd5   : > { %v623_v3 = vsub.f32 %v618_v60, %v1079_v26 }
  0xd6   : > { %v252_v41 = vrot.slane %v251_v5, 4  ;;  %v1162_v13 = vmax.f32 %v358_v63, %v359_v10  ;;  %v1164_v45 = vmax.f32 %v485_v11, 0.0  ;;  %v486_v14 = vmin.f32 %v462_v1, %v482_v42 }
  0xd7   : > { %v620_v1 = vsub.f32 %v606_v50, %v1079_v26 }
  0xd8   : > { %v253_v16 = vmax.f32 %v251_v5, %v252_v41  ;;  %vm361_vm14 = vcmp.eq.f32.partialorder %v1121_v12, %v1162_v13  ;;  %vm362_vm15 = vcmp.eq.f32.partialorder %v1135_v19, %v1162_v13  ;;  %vm363_vm0 = vcmp.eq.f32.partialorder %v1142_v31, %v1162_v13  ;;  %v1176_v17 = vpop.permute.xlu1 %582 }
  0xd9   : > { %vm364_vm1 = vcmp.eq.f32.partialorder %v1138_v25, %v1162_v13  ;;  %v365_v18 = vsel %vm361_vm14, %v1103_v61, 32  ;;  %v366_v20 = vsel %vm362_vm15, %v1110_v6, 32  ;;  %v367_v21 = vsel %vm363_vm0, %v1113_v7, 32 }
  0xda   : > { %v254_v22 = vrot.slane %v253_v16, 2  ;;  %v368_v23 = vsel %vm364_vm1, %v1116_v8, 32  ;;  %vm369_vm2 = vcmp.lt.s32.totalorder %v365_v18, %v366_v20  ;;  %v492_v27 = vmax.f32 %v1166_v46, %v1164_v45 }
  0xdb   : > { %v370_v24 = vsel %vm369_vm2, %v365_v18, %v366_v20  ;;  %vm371_vm3 = vcmp.lt.s32.totalorder %v367_v21, %v368_v23  ;;  %v1186_v28 = vmax.f32 %v486_v14, 0.0  ;;  %v600_v63 = vsub.f32 %v1079_v26, %v1176_v17 }
  0xdc   : > { %v255_v29 = vmax.f32 %v253_v16, %v254_v22  ;;  %v372_v30 = vsel %vm371_vm3, %v367_v21, %v368_v23  ;;  %v1188_v32 = vpop.permute.xlu1 %592  ;;  %v601_v5 = vsub.f32 %v1079_v26, %v588_v34 }
  0xdd   : > { %vm373_vm4 = vcmp.lt.s32.totalorder %v370_v24, %v372_v30  ;;  %v493_v33 = vmax.f32 %v1186_v28, %v1168_v15  ;;  %v602_v11 = vsub.f32 %v1079_v26, %v1188_v32  ;;  %v624_v16 = vmin.f32 %v600_v63, %v620_v1 }
  0xde   : > { %v256_v35 = vrot.slane %v255_v29, 1  ;;  %v374_v36 = vsel %vm373_vm4, %v370_v24, %v372_v30 }
  0xdf   : > { %v375_v37 = vrot.slane %v374_v36, 4  ;;  %v494_v38 = vmax.f32 %v492_v27, %v493_v33  ;;  %v1228_v30 = vmax.f32 %v624_v16, 0.0 }
  0xe0   : > { %v257_v39 = vmax.f32 %v255_v29, %v256_v35  ;;  %v598_v40 = vpop.permute.xlu1 %597 }
  0xe1   : > { %vm376_vm6 = vcmp.lt.s32.totalorder %v374_v36, %v375_v37  ;;  %v495_v43 = vrot.slane %v494_v38, 4  ;;  %v603_v0 = vsub.f32 %v1079_v26, %v598_v40 }
  0xe2   : > { %v377_v44 = vsel %vm376_vm6, %v374_v36, %v375_v37  ;;  %v259_v47 = vsel %vm258_vm5, %v1118_v9, %v257_v39 }
  0xe3   : > { %v378_v48 = vrot.slane %v377_v44, 2  ;;  %v496_v49 = vmax.f32 %v494_v38, %v495_v43  ;;  %v261_v51 = vrot.slane %v259_v47, 6  ;;  %v627_v17 = vmin.f32 %v603_v0, %v623_v3 }
  0xe5   : > { %vm379_vm9 = vcmp.lt.s32.totalorder %v377_v44, %v378_v48  ;;  %v497_v52 = vrot.slane %v496_v49, 2  ;;  %v1195_v53 = vsel %vm263_vm7, 0.0, %v261_v51  ;;  %v610_v55 = vpop.permute.xlu1 %609  ;;  %v1230_v32 = vmax.f32 %v627_v17, 0.0 }
  0xe6   : > { %v380_v54 = vsel %vm379_vm9, %v377_v44, %v378_v48  ;;  %v266_v56 = vsel %vm265_vm8, %v1195_v53, -inf  ;;  %v621_v42 = vsub.f32 %v610_v55, %v1079_v26 }
  0xe7   : > { %v381_v57 = vrot.slane %v380_v54, 1  ;;  %v498_v58 = vmax.f32 %v496_v49, %v497_v52  ;;  %v267_v59 = vrot.slane %v266_v56, 4 }
  0xe8   : > { %v625_v23 = vmin.f32 %v601_v5, %v621_v42 }
  0xe9   : > { %v499_v9 = vrot.slane %v498_v58, 1  ;;  %v268_v62 = vmax.f32 %v266_v56, %v267_v59  ;;  %vm382_vm10 = vcmp.lt.s32.totalorder %v380_v54, %v381_v57  ;;  %v614_v2 = vpop.permute.xlu1 %613 }
  0xea   : > { %v383_v10 = vsel %vm382_vm10, %v380_v54, %v381_v57  ;;  %v622_v14 = vsub.f32 %v614_v2, %v1079_v26  ;;  %v1235_v39 = vmax.f32 %v625_v23, 0.0 }
  0xeb   : > { %v1204_v4 = vmax.f32 %v498_v58, %v499_v9  ;;  %v269_v41 = vrot.slane %v268_v62, 2  ;;  %vm384_vm15 = vcmp.eq.s32.totalorder %v1103_v61, %v383_v10  ;;  %vm385_vm0 = vcmp.eq.s32.totalorder %v1110_v6, %v383_v10 }
  0xec   : > { %vm386_vm1 = vcmp.eq.s32.totalorder %v1113_v7, %v383_v10  ;;  %vm387_vm2 = vcmp.eq.s32.totalorder %v1116_v8, %v383_v10  ;;  %v626_v26 = vmin.f32 %v602_v11, %v622_v14  ;;  %v388_v29 = vsel %vm384_vm15, -inf, %v1121_v12 }
  0xed   : > { %vm501_vm11 = vcmp.eq.f32.partialorder %v1166_v46, %v1204_v4  ;;  %vm502_vm12 = vcmp.eq.f32.partialorder %v1164_v45, %v1204_v4  ;;  %vm503_vm13 = vcmp.eq.f32.partialorder %v1186_v28, %v1204_v4  ;;  %vm504_vm14 = vcmp.eq.f32.partialorder %v1168_v15, %v1204_v4 }
  0xee   : > { %v505_v18 = vsel %vm501_vm11, %v1103_v61, 32  ;;  %v506_v20 = vsel %vm502_vm12, %v1110_v6, 32  ;;  %v507_v21 = vsel %vm503_vm13, %v1113_v7, 32  ;;  %v508_v22 = vsel %vm504_vm14, %v1116_v8, 32 }
  0xef   : > { %v270_v24 = vmax.f32 %v268_v62, %v269_v41  ;;  %vm509_vm3 = vcmp.lt.s32.totalorder %v505_v18, %v506_v20  ;;  %vm511_vm4 = vcmp.lt.s32.totalorder %v507_v21, %v508_v22  ;;  %v389_v33 = vsel %vm385_vm0, -inf, %v1135_v19 }
  0xf0   : > { %v390_v34 = vsel %vm386_vm1, -inf, %v1142_v31  ;;  %v391_v35 = vsel %vm387_vm2, -inf, %v1138_v25  ;;  %v510_v37 = vsel %vm509_vm3, %v505_v18, %v506_v20  ;;  %v512_v38 = vsel %vm511_vm4, %v507_v21, %v508_v22 }
  0xf1   : > { %v271_v27 = vrot.slane %v270_v24, 1  ;;  %v1237_v40 = vmax.f32 %v626_v26, 0.0  ;;  %v392_v12 = vmax.f32 %v388_v29, %v389_v33  ;;  %v393_v43 = vmax.f32 %v390_v34, %v391_v35 }
  0xf2   : > { %vm513_vm9 = vcmp.lt.s32.totalorder %v510_v37, %v512_v38  ;;  %v632_v31 = vmax.f32 %v1228_v30, %v1235_v39 }
  0xf3   : > { %v272_v36 = vmax.f32 %v270_v24, %v271_v27  ;;  %v633_v25 = vmax.f32 %v1237_v40, %v1230_v32  ;;  %v394_v48 = vmax.f32 %v392_v12, %v393_v43  ;;  %v514_v49 = vsel %vm513_vm9, %v510_v37, %v512_v38 }
  0xf4   : > { %v515_v52 = vrot.slane %v514_v49, 4 }
  0xf5   : > { %vm273_vm6 = vcmp.eq.f32.partialorder %v1195_v53, %v272_v36  ;;  %v634_v51 = vmax.f32 %v632_v31, %v633_v25  ;;  %v395_v55 = vrot.slane %v394_v48, 4 }
  0xf6   : > { %v274_v44 = vsel %vm273_vm6, %v1103_v61, 4  ;;  %vm516_vm11 = vcmp.lt.s32.totalorder %v514_v49, %v515_v52 }
  0xf7   : > { %v275_v19 = vsel %vm265_vm8, %v274_v44, 2147483647  ;;  %v635_v56 = vrot.slane %v634_v51, 4  ;;  %v396_v57 = vmax.f32 %v394_v48, %v395_v55  ;;  %v517_v58 = vsel %vm516_vm11, %v514_v49, %v515_v52 }
  0xf8   : > { %v276_v47 = vrot.slane %v275_v19, 4  ;;  %v518_v63 = vrot.slane %v517_v58, 2 }
  0xf9   : > { %v636_v59 = vmax.f32 %v634_v51, %v635_v56  ;;  %v397_v62 = vrot.slane %v396_v57, 2 }
  0xfa   : > { %vm277_vm10 = vcmp.lt.s32.totalorder %v275_v19, %v276_v47  ;;  %vm519_vm15 = vcmp.lt.s32.totalorder %v517_v58, %v518_v63 }
  0xfb   : > { %v278_v50 = vsel %vm277_vm10, %v275_v19, %v276_v47  ;;  %v637_v0 = vrot.slane %v636_v59, 2  ;;  %v398_v2 = vmax.f32 %v396_v57, %v397_v62  ;;  %v520_v41 = vsel %vm519_vm15, %v517_v58, %v518_v63 }
  0xfc   : > { %v279_v54 = vrot.slane %v278_v50, 2  ;;  %v521_v18 = vrot.slane %v520_v41, 1 }
  0xfd   : > { %v638_v10 = vmax.f32 %v636_v59, %v637_v0  ;;  %v399_v42 = vrot.slane %v398_v2, 1 }
  0xfe   : > { %vm280_vm12 = vcmp.lt.s32.totalorder %v278_v50, %v279_v54  ;;  %vm522_vm0 = vcmp.lt.s32.totalorder %v520_v41, %v521_v18 }
  0xff   : > { %v281_v9 = vsel %vm280_vm12, %v278_v50, %v279_v54  ;;  %v639_v16 = vrot.slane %v638_v10, 1  ;;  %v400_v20 = vmax.f32 %v398_v2, %v399_v42  ;;  %v523_v24 = vsel %vm522_vm0, %v520_v41, %v521_v18 }
 0x100   : > { %v282_v60 = vrot.slane %v281_v9, 1  ;;  %vm524_vm6 = vcmp.eq.s32.totalorder %v1103_v61, %v523_v24  ;;  %vm525_vm9 = vcmp.eq.s32.totalorder %v1110_v6, %v523_v24  ;;  %vm526_vm10 = vcmp.eq.s32.totalorder %v1113_v7, %v523_v24 }
 0x101   : > { %v1249_v22 = vmax.f32 %v638_v10, %v639_v16  ;;  %vm527_vm11 = vcmp.eq.s32.totalorder %v1116_v8, %v523_v24  ;;  %v528_v43 = vsel %vm524_vm6, -inf, %v1166_v46  ;;  %v529_v44 = vsel %vm525_vm9, -inf, %v1164_v45 }
 0x102   : > { %vm283_vm13 = vcmp.lt.s32.totalorder %v281_v9, %v282_v60  ;;  %v530_v19 = vsel %vm526_vm10, -inf, %v1186_v28  ;;  %v531_v31 = vsel %vm527_vm11, -inf, %v1168_v15  ;;  %v532_v49 = vmax.f32 %v528_v43, %v529_v44 }
 0x103   : > { %v284_v1 = vsel %vm283_vm13, %v281_v9, %v282_v60  ;;  %vm641_vm1 = vcmp.eq.f32.partialorder %v1228_v30, %v1249_v22  ;;  %vm642_vm2 = vcmp.eq.f32.partialorder %v1235_v39, %v1249_v22  ;;  %vm643_vm3 = vcmp.eq.f32.partialorder %v1237_v40, %v1249_v22 }
 0x104   : > { %vm285_vm14 = vcmp.eq.s32.totalorder %v1103_v61, %v284_v1  ;;  %vm644_vm4 = vcmp.eq.f32.partialorder %v1230_v32, %v1249_v22  ;;  %v646_v34 = vsel %vm642_vm2, %v1110_v6, 32  ;;  %v647_v35 = vsel %vm643_vm3, %v1113_v7, 32 }
 0x105   : > { %v286_v3 = vsel %vm285_vm14, -inf, %v1195_v53  ;;  %v401_v53 = vsel %vm258_vm5, %v1162_v13, %v400_v20  ;;  %v645_v13 = vsel %vm641_vm1, %v1103_v61, 32  ;;  %v648_v37 = vsel %vm644_vm4, %v1116_v8, 32 }
 0x106   : > { %v287_v5 = vsel %vm265_vm8, %v286_v3, -inf  ;;  %v403_v27 = vrot.slane %v401_v53, 6  ;;  %vm649_vm12 = vcmp.lt.s32.totalorder %v645_v13, %v646_v34  ;;  %vm651_vm13 = vcmp.lt.s32.totalorder %v647_v35, %v648_v37 }
 0x107   : > { %v288_v11 = vrot.slane %v287_v5, 4  ;;  %v650_v47 = vsel %vm649_vm12, %v645_v13, %v646_v34  ;;  %v652_v48 = vsel %vm651_vm13, %v647_v35, %v648_v37  ;;  %v533_v50 = vmax.f32 %v530_v19, %v531_v31 }
 0x108   : > { %vm653_vm14 = vcmp.lt.s32.totalorder %v650_v47, %v652_v48 }
 0x109   : > { %v289_v14 = vmax.f32 %v287_v5, %v288_v11  ;;  %v534_v54 = vmax.f32 %v532_v49, %v533_v50  ;;  %v654_v56 = vsel %vm653_vm14, %v650_v47, %v652_v48 }
 0x10a   : > { %v655_v45 = vrot.slane %v654_v56, 4 }
 0x10b   : > { %v290_v17 = vrot.slane %v289_v14, 2  ;;  %v535_v57 = vrot.slane %v534_v54, 4 }
 0x10c   : > { %vm656_vm1 = vcmp.lt.s32.totalorder %v654_v56, %v655_v45 }
 0x10d   : > { %v291_v21 = vmax.f32 %v289_v14, %v290_v17  ;;  %v536_v15 = vmax.f32 %v534_v54, %v535_v57  ;;  %v657_v60 = vsel %vm656_vm1, %v654_v56, %v655_v45 }
 0x10e   : > { %v658_v1 = vrot.slane %v657_v60, 2 }
 0x10f   : > { %v292_v23 = vrot.slane %v291_v21, 1  ;;  %v537_v62 = vrot.slane %v536_v15, 2 }
 0x110   : > { %vm659_vm6 = vcmp.lt.s32.totalorder %v657_v60, %v658_v1 }
 0x111   : > { %v293_v26 = vmax.f32 %v291_v21, %v292_v23  ;;  %v538_v2 = vmax.f32 %v536_v15, %v537_v62  ;;  %v660_v41 = vsel %vm659_vm6, %v657_v60, %v658_v1 }
 0x112   : > { %v661_v17 = vrot.slane %v660_v41, 1 }
 0x113   : > { %v294_v29 = vsel %vm258_vm5, %v272_v36, %v293_v26  ;;  %v539_v11 = vrot.slane %v538_v2, 1 }
 0x114   : > { %v405_v33 = vsel %vm263_vm7, %v294_v29, %v403_v27  ;;  %vm662_vm9 = vcmp.lt.s32.totalorder %v660_v41, %v661_v17 }
 0x115   : > { %v406_v38 = vsel %vm265_vm8, %v405_v33, -inf  ;;  %v540_v16 = vmax.f32 %v538_v2, %v539_v11  ;;  %v663_v24 = vsel %vm662_vm9, %v660_v41, %v661_v17 }
 0x116   : > { %v407_v36 = vrot.slane %v406_v38, 4  ;;  %vm664_vm10 = vcmp.eq.s32.totalorder %v1103_v61, %v663_v24  ;;  %vm665_vm11 = vcmp.eq.s32.totalorder %v1110_v6, %v663_v24  ;;  %vm666_vm12 = vcmp.eq.s32.totalorder %v1113_v7, %v663_v24 }
 0x117   : > { %v541_v23 = vsel %vm258_vm5, %v1204_v4, %v540_v16  ;;  %vm667_vm13 = vcmp.eq.s32.totalorder %v1116_v8, %v663_v24  ;;  %v668_v4 = vsel %vm664_vm10, -inf, %v1228_v30  ;;  %v669_v35 = vsel %vm665_vm11, -inf, %v1235_v39 }
 0x118   : > { %v408_v12 = vmax.f32 %v406_v38, %v407_v36  ;;  %v543_v26 = vrot.slane %v541_v23, 6  ;;  %v670_v37 = vsel %vm666_vm12, -inf, %v1237_v40  ;;  %v671_v38 = vsel %vm667_vm13, -inf, %v1230_v32 }
 0x119   : > { %v673_v43 = vmax.f32 %v670_v37, %v671_v38 }
 0x11a   : > { %v409_v25 = vrot.slane %v408_v12, 2 }
 0x11c   : > { %v410_v51 = vmax.f32 %v408_v12, %v409_v25  ;;  %v672_v12 = vmax.f32 %v668_v4, %v669_v35 }
 0x11e   : > { %v411_v52 = vrot.slane %v410_v51, 1  ;;  %v674_v6 = vmax.f32 %v672_v12, %v673_v43 }
 0x120   : > { %v412_v55 = vmax.f32 %v410_v51, %v411_v52  ;;  %v675_v8 = vrot.slane %v674_v6, 4 }
 0x122   : > { %vm413_vm15 = vcmp.eq.f32.partialorder %v405_v33, %v412_v55  ;;  %v676_v39 = vmax.f32 %v674_v6, %v675_v8 }
 0x123   : > { %v414_v46 = vsel %vm413_vm15, %v1103_v61, 4 }
 0x124   : > { %v415_v28 = vsel %vm265_vm8, %v414_v46, 2147483647  ;;  %v677_v32 = vrot.slane %v676_v39, 2 }
 0x125   : > { %v416_v58 = vrot.slane %v415_v28, 4 }
 0x126   : > { %v678_v50 = vmax.f32 %v676_v39, %v677_v32 }
 0x127   : > { %vm417_vm0 = vcmp.lt.s32.totalorder %v415_v28, %v416_v58 }
 0x128   : > { %v418_v59 = vsel %vm417_vm0, %v415_v28, %v416_v58 }
 0x129   : > { %v419_v9 = vrot.slane %v418_v59, 2 }
 0x12b   : > { %vm420_vm2 = vcmp.lt.s32.totalorder %v418_v59, %v419_v9 }
 0x12c   : > { %v421_v63 = vsel %vm420_vm2, %v418_v59, %v419_v9 }
 0x12d   : > { %v422_v0 = vrot.slane %v421_v63, 1 }
 0x12f   : > { %vm423_vm3 = vcmp.lt.s32.totalorder %v421_v63, %v422_v0 }
 0x130   : > { %v424_v3 = vsel %vm423_vm3, %v421_v63, %v422_v0 }
 0x131   : > { %vm425_vm4 = vcmp.eq.s32.totalorder %v1103_v61, %v424_v3 }
 0x132   : > { %v426_v5 = vsel %vm425_vm4, -inf, %v405_v33 }
 0x133   : > { %v427_v10 = vsel %vm265_vm8, %v426_v5, -inf }
 0x134   : > { %v428_v42 = vrot.slane %v427_v10, 4 }
 0x136   : > { %v429_v14 = vmax.f32 %v427_v10, %v428_v42 }
 0x138   : > { %v430_v18 = vrot.slane %v429_v14, 2 }
 0x13a   : > { %v431_v20 = vmax.f32 %v429_v14, %v430_v18 }
 0x13c   : > { %v432_v21 = vrot.slane %v431_v20, 1 }
 0x13e   : > { %v433_v53 = vmax.f32 %v431_v20, %v432_v21 }
 0x140   : > { %v434_v27 = vsel %vm258_vm5, %v412_v55, %v433_v53  ;;  %v679_v55 = vrot.slane %v678_v50, 1 }
 0x141   : > { %v545_v29 = vsel %vm263_vm7, %v434_v27, %v543_v26 }
 0x142   : > { %v546_v13 = vsel %vm265_vm8, %v545_v29, -inf  ;;  %v680_v57 = vmax.f32 %v678_v50, %v679_v55 }
 0x143   : > { %v547_v33 = vrot.slane %v546_v13, 4 }
 0x144   : > { %v681_v15 = vsel %vm258_vm5, %v1249_v22, %v680_v57 }
 0x145   : > { %v548_v34 = vmax.f32 %v546_v13, %v547_v33  ;;  %v683_v9 = vrot.slane %v681_v15, 6 }
 0x147   : > { %v549_v36 = vrot.slane %v548_v34, 2 }
 0x149   : > { %v550_v44 = vmax.f32 %v548_v34, %v549_v36 }
 0x14b   : > { %v551_v19 = vrot.slane %v550_v44, 1 }
 0x14d   : > { %v552_v31 = vmax.f32 %v550_v44, %v551_v19 }
 0x14f   : > { %vm553_vm14 = vcmp.eq.f32.partialorder %v545_v29, %v552_v31 }
 0x150   : > { %v554_v7 = vsel %vm553_vm14, %v1103_v61, 4 }
 0x151   : > { %v555_v25 = vsel %vm265_vm8, %v554_v7, 2147483647 }
 0x152   : > { %v556_v30 = vrot.slane %v555_v25, 4 }
 0x154   : > { %vm557_vm15 = vcmp.lt.s32.totalorder %v555_v25, %v556_v30 }
 0x155   : > { %v558_v47 = vsel %vm557_vm15, %v555_v25, %v556_v30 }
 0x156   : > { %v559_v40 = vrot.slane %v558_v47, 2 }
 0x158   : > { %vm560_vm0 = vcmp.lt.s32.totalorder %v558_v47, %v559_v40 }
 0x159   : > { %v561_v48 = vsel %vm560_vm0, %v558_v47, %v559_v40 }
 0x15a   : > { %v562_v49 = vrot.slane %v561_v48, 1 }
 0x15c   : > { %vm563_vm1 = vcmp.lt.s32.totalorder %v561_v48, %v562_v49 }
 0x15d   : > { %v564_v51 = vsel %vm563_vm1, %v561_v48, %v562_v49 }
 0x15e   : > { %vm565_vm2 = vcmp.eq.s32.totalorder %v1103_v61, %v564_v51 }
 0x15f   : > { %v566_v52 = vsel %vm565_vm2, -inf, %v545_v29 }
 0x160   : > { %v567_v54 = vsel %vm265_vm8, %v566_v52, -inf }
 0x161   : > { %v568_v56 = vrot.slane %v567_v54, 4 }
 0x163   : > { %v569_v46 = vmax.f32 %v567_v54, %v568_v56 }
 0x165   : > { %v570_v45 = vrot.slane %v569_v46, 2 }
 0x167   : > { %v571_v28 = vmax.f32 %v569_v46, %v570_v45 }
 0x169   : > { %v572_v58 = vrot.slane %v571_v28, 1 }
 0x16b   : > { %v573_v59 = vmax.f32 %v571_v28, %v572_v58 }
 0x16d   : > { %v574_v60 = vsel %vm258_vm5, %v552_v31, %v573_v59 }
 0x16e   : > { %v685_v62 = vsel %vm263_vm7, %v574_v60, %v683_v9 }
 0x16f   : > { %v686_v63 = vsel %vm265_vm8, %v685_v62, -inf }
 0x170   : > { %v687_v0 = vrot.slane %v686_v63, 4 }
 0x172   : > { %v688_v1 = vmax.f32 %v686_v63, %v687_v0 }
 0x174   : > { %v689_v2 = vrot.slane %v688_v1, 2 }
 0x176   : > { %v690_v3 = vmax.f32 %v688_v1, %v689_v2 }
 0x178   : > { %v691_v5 = vrot.slane %v690_v3, 1 }
 0x17a   : > { %v692_v10 = vmax.f32 %v690_v3, %v691_v5 }
 0x17c   : > { %vm693_vm3 = vcmp.eq.f32.partialorder %v685_v62, %v692_v10 }
 0x17d   : > { %v694_v11 = vsel %vm693_vm3, %v1103_v61, 4 }
 0x17e   : > { %v695_v22 = vsel %vm265_vm8, %v694_v11, 2147483647 }
 0x17f   : > { %v696_v42 = vrot.slane %v695_v22, 4 }
 0x181   : > { %vm697_vm4 = vcmp.lt.s32.totalorder %v695_v22, %v696_v42 }
 0x182   : > { %v698_v41 = vsel %vm697_vm4, %v695_v22, %v696_v42 }
 0x183   : > { %v699_v14 = vrot.slane %v698_v41, 2 }
 0x185   : > { %vm700_vm7 = vcmp.lt.s32.totalorder %v698_v41, %v699_v14 }
 0x186   : > { %v701_v16 = vsel %vm700_vm7, %v698_v41, %v699_v14 }
 0x187   : > { %v702_v17 = vrot.slane %v701_v16, 1 }
 0x189   : > { %vm703_vm6 = vcmp.lt.s32.totalorder %v701_v16, %v702_v17 }
 0x18a   : > { %v704_v18 = vsel %vm703_vm6, %v701_v16, %v702_v17 }
 0x18b   : > { %vm705_vm9 = vcmp.eq.s32.totalorder %v1103_v61, %v704_v18 }
 0x18c   : > { %v706_v20 = vsel %vm705_vm9, -inf, %v685_v62 }
 0x18d   : > { %v707_v21 = vsel %vm265_vm8, %v706_v20, -inf }
 0x18e   : > { %v708_v23 = vrot.slane %v707_v21, 4 }
 0x190   : > { %v709_v53 = vmax.f32 %v707_v21, %v708_v23 }
 0x192   : > { %v710_v24 = vrot.slane %v709_v53, 2 }
 0x194   : > { %v711_v26 = vmax.f32 %v709_v53, %v710_v24 }
 0x196   : > { %v712_v27 = vrot.slane %v711_v26, 1 }
 0x198   : > { %v713_v29 = vmax.f32 %v711_v26, %v712_v27 }
 0x19a   : > { %v714_v61 = vsel %vm258_vm5, %v692_v10, %v713_v29 }
 0x19b   : > { %715 = vst [vmem:[%s133_s28] sm:$0x3] %v714_v61 }
 0x19c   : > { %921 = shalt.err (!%p918_p5)
}
 0x19d   : > { %s922_s15 = scalar_lea.hbm %s1311_s3, 32  ;;  %s926_s21 = scalar_lea.hbm %s1360_s1, 64 }
 0x19e   : > { %p923_p6 = scmp.ne.s32.totalorder %s1311_s3, %s922_s15  ;;  %p927_p10 = scmp.lt.u32.totalorder %s1311_s3, %s1360_s1 }
 0x19f   : > { %p928_p11 = scmp.lt.u32.totalorder %s926_s21, %s922_s15  ;;  %p930_p13 = scmp.lt.u32.totalorder %s922_s15, %s1311_s3 }
 0x1a0   : > { %p924_p7 = pnand %p923_p6, %p1041_p4 }
 0x1a1   : > { %p929_p12 = por %p928_p11, %p927_p10 }
 0x1a2   : > { %p925_p9 = pneg %p924_p7 }
 0x1a3   : > { %p931_p0 = por %p930_p13, %p929_p12 }
 0x1a5   : > { %p932_p1 = pnand %p931_p0, %p925_p9 }
 0x1a7   : > { %935 = shalt.err (!%p932_p1)
}
 0x1a8   : > { %835 = dma.vmem_to_hbm [thread:$0]  (%p1041_p4), %s1313_s29, 32, %s1311_s3, %s717_s4  }
 0x1a9 PF: > { %p841_p2 = scmp.ge.s32.totalorder %s986_s11, 2  ;;  %s744_s24 = sand.u32 1, %s966_s6  }
 0x1aa   : > { %s745_s25 = scalar_lea.sflag [#allocation3], %s744_s24 }
 0x1ab   : > { %p838_p3 = pnand %p841_p2, %p1048_p8 }
 0x1ad   : > { %961 = dma.done.wait (!%p838_p3), %s745_s25, 32  }
 0x1ae   : > { %963 = vsyncadd (!%p838_p3), %s745_s25, 4294967264  ;;  %s14_s11 = sadd.s32 1, %s986_s11   ;;  %s1363_s6 = smov %s970_s7 }
 0x1af   : > { %p11_p5 = scmp.ge.s32.totalorder %s14_s11, 4   ;;  %s1364_s7 = smov %s974_s8 }
 0x1b0   : > { %s1365_s8 = smov %s1054_s19  ;;  %s1366_s9 = smov %s982_s10 }
 0x1b1   : > { %s1367_s10 = smov %s1369_s14  ;;  %13 = sbr.rel (!%p11_p5) target bundleno = 4 (0x4), region = 62 }
 0x1b8   :  { %750 = vsyncpa [#allocation3], 1 }
 0x1b9   :  { %752 = vsyncpa [#allocation3 + $0x1], 1 }

</bundles_post_ra>
